<compile_context>
chip_gen: v6e
topology: v6e:2x2x1
jax: 0.10.0
libtpu: 0.0.40
codegen_flags: <defaults>
</compile_context>

<pallas_src>
import numpy as np
import jax
import jax.numpy as jnp
from jax.experimental import pallas as pl
from jax.experimental.pallas import tpu as pltpu


# Below this N (or for N % 128 != 0) a fused plain-jnp path avoids pallas_call dispatch
# overhead / pad+slice HBM copies.
MIN_PALLAS_N = 16384


# ----------------------------------------------------------------------------
# Small host-side hardware helpers
# ----------------------------------------------------------------------------
def _device_kind():
    try:
        return jax.devices()[0].device_kind.lower()
    except Exception:  # pragma: no cover - defensive
        return ""


def _block_cfg(R):
    """Per-generation (block_rows, vmem_limit_bytes). Each stream block is
    block_rows*128*4 bytes; 3 streams double-buffered is the budget."""
    kind = _device_kind()
    if "v5" in kind:
        max_rows, vmem_limit = 2048, None        # 6 MiB total, under the 16 MiB default scope
    elif "v7" in kind or "7x" in kind:
        max_rows, vmem_limit = 8192, 48 << 20    # 24 MiB/TC; v7x has 64 MiB VMEM per TC
    else:                                        # v6e (and default)
        max_rows, vmem_limit = 8192, 64 << 20    # 24 MiB, 128 MiB physical VMEM
    if R <= max_rows:
        return R, vmem_limit                     # single block (full dim -> always legal)
    return max_rows, vmem_limit                  # multiple of 8; ragged last block is fine


def _dim_semantics(n_blocks):
    kind = _device_kind()
    if n_blocks > 1 and ("v7" in kind or "7x" in kind) and hasattr(pltpu, "CORE_PARALLEL"):
        # v7x has 2 TensorCores per chip; CORE_PARALLEL shards the grid across them
        # (plain "parallel" measurably does not change codegen).
        return (pltpu.CORE_PARALLEL,)
    return ("parallel",)


def _compiler_params(n_blocks, vmem_limit):
    kwargs = dict(dimension_semantics=_dim_semantics(n_blocks))
    if vmem_limit is not None:
        kwargs["vmem_limit_bytes"] = int(vmem_limit)
    return pltpu.CompilerParams(**kwargs)


# ----------------------------------------------------------------------------
# Host-side (NumPy, float64) parameter initialization
# ----------------------------------------------------------------------------
def _fitpack_interp_knots(x, k):
    """FITPACK (fpcurf, s=0) knot placement for odd k: clamped ends + interior
    knots at x[(k//2)+1 : m-(k//2)-1]."""
    assert k % 2 == 1
    m = len(x)
    interior = x[(k // 2) + 1: m - (k // 2) - 1]
    return np.concatenate([np.full(k + 1, x[0]), interior, np.full(k + 1, x[-1])])


def _bspline_basis(xq, t, k):
    """Cox-de Boor basis matrix, shape (len(xq), len(t)-k-1)."""
    xq = np.asarray(xq, dtype=np.float64)
    nt = len(t)
    B = np.zeros((len(xq), nt - 1))
    for i in range(nt - 1):
        if t[i] < t[i + 1]:
            B[:, i] = ((xq >= t[i]) & (xq < t[i + 1])).astype(np.float64)
    last = int(np.max(np.where(t[:-1] < t[1:])[0]))
    B[xq == t[-1], last] = 1.0
    for d in range(1, k + 1):
        Bn = np.zeros((len(xq), nt - 1 - d))
        for i in range(nt - 1 - d):
            term = np.zeros(len(xq))
            den1 = t[i + d] - t[i]
            if den1 > 0:
                term += (xq - t[i]) / den1 * B[:, i]
            den2 = t[i + d + 1] - t[i + 1]
            if den2 > 0:
                term += (t[i + d + 1] - xq) / den2 * B[:, i + 1]
            Bn[:, i] = term
        B = Bn
    return B


def _splev_ref(xq, t, c, k):
    """Pure-NumPy de Boor evaluation (== scipy splev, ext=0: boundary-piece
    polynomial extrapolation). Used for reference + piecewise-cubic conversion."""
    xq = np.asarray(xq, dtype=np.float64).reshape(-1)
    n = len(t) - k - 1
    out = np.empty(len(xq))
    for m, xv in enumerate(xq):
        j = int(np.searchsorted(t, xv, side="right")) - 1
        j = min(max(j, k), n - 1)
        d = [float(c[i + j - k]) for i in range(k + 1)]
        for r in range(1, k + 1):
            for i in range(k, r - 1, -1):
                lo = i + j - k
                hi = i + 1 + j - r
                alpha = (xv - t[lo]) / (t[hi] - t[lo])
                d[i] = (1.0 - alpha) * d[i - 1] + alpha * d[i]
        out[m] = d[k]
    return out


def _spline_to_local_cubic(t, c, k):
    """Convert B-spline (t, c, k=3) to piecewise cubics in the LOCAL (x - left) basis:
    lefts[s] = segment left breakpoint, coefs[s] = (c0,c1,c2,c3) with
    y = c0 + c1*u + c2*u^2 + c3*u^3, u = x - lefts[s] on segment s.
    The local basis is far better conditioned in float32 than the expanded global basis."""
    assert k == 3
    brk = np.unique(np.asarray(t[k: len(t) - k], dtype=np.float64))
    n_seg = len(brk) - 1
    lefts, coefs = [], []
    for s in range(n_seg):
        a, b = brk[s], brk[s + 1]
        xs = a + (b - a) * np.linspace(0.1, 0.9, k + 1)
        ys = _splev_ref(xs, t, c, k)
        V = np.vander(xs - a, k + 1, increasing=True)
        c0, c1, c2, c3 = np.linalg.solve(V, ys)
        lefts.append(float(a))
        coefs.append((float(c0), float(c1), float(c2), float(c3)))
    return tuple(lefts), tuple(coefs)


def init_random_spline_scm_params(span=6, num_anchors=10, order=3,
                                  range_scale=1.0, seed=0):
    """Deterministic stand-in for RandomSplineSCM.__init__ (no scipy, no files)."""
    rng = np.random.default_rng(seed)
    x = np.linspace(-span, span, num_anchors).astype(np.float64)
    y = rng.uniform(-range_scale * span, range_scale * span, size=(num_anchors,))
    t = _fitpack_interp_knots(x, order)
    A = _bspline_basis(x, t, order)           # (num_anchors, num_anchors)
    c = np.linalg.solve(A, y)                 # interpolating B-spline coefficients
    lefts, coefs = _spline_to_local_cubic(t, c, order)
    return {
        "knots": t, "bspl_coefs": c, "order": order,
        "lefts": lefts,      # tuple of Python floats, length S (=7)
        "coefs": coefs,      # tuple of 4-tuples of Python floats, (S, 4), local basis
    }


# ----------------------------------------------------------------------------
# Spline evaluation (shared by the Pallas kernels and the jnp fallback)
# ----------------------------------------------------------------------------
def _make_eval(lefts, coefs):
    """Incrementally mask-select (left, c0..c3) per element, then one Horner in the
    local (x - left) basis. Constants are compile-time closure values."""
    n_seg = len(coefs)

    def eval_fn(x):
        a = jnp.full_like(x, lefts[0])
        c0 = jnp.full_like(x, coefs[0][0])
        c1 = jnp.full_like(x, coefs[0][1])
        c2 = jnp.full_like(x, coefs[0][2])
        c3 = jnp.full_like(x, coefs[0][3])
        for s in range(1, n_seg):
            m = x >= lefts[s]
            a = jnp.where(m, lefts[s], a)
            c0 = jnp.where(m, coefs[s][0], c0)
            c1 = jnp.where(m, coefs[s][1], c1)
            c2 = jnp.where(m, coefs[s][2], c2)
            c3 = jnp.where(m, coefs[s][3], c3)
        u = x - a
        # First/last pieces extrapolate, matching splev ext=0.
        return c0 + u * (c1 + u * (c2 + u * c3))

    return eval_fn


# ----------------------------------------------------------------------------
# Pallas kernels
# ----------------------------------------------------------------------------
def _make_kernel_xz(lefts, coefs, input_noise, output_noise):
    eval_fn = _make_eval(lefts, coefs)

    def kernel(x_ref, z_ref, y_ref):
        x = x_ref[...]                         # (block_rows, 128) f32
        z = z_ref[...]
        if input_noise:
            x = x + z
        y = eval_fn(x)
        if output_noise:
            y = y + z
        y_ref[...] = y

    return kernel


def _make_kernel_rng(lefts, coefs, input_noise, output_noise):
    eval_fn = _make_eval(lefts, coefs)

    def kernel(seed_ref, x_ref, y_ref):
        # Per-block seeding -> independent streams regardless of grid sharding.
        pltpu.prng_seed(seed_ref[0], pl.program_id(0))
        x = x_ref[...]
        z = pltpu.stateful_normal(x.shape, jnp.float32)
        if input_noise:
            x = x + z
        y = eval_fn(x)
        if output_noise:
            y = y + z
        y_ref[...] = y

    return kernel


def _forward_pallas_xz(params, x2, z2, input_noise, output_noise):
    R = x2.shape[0]
    block_rows, vmem_limit = _block_cfg(R)
    n_blocks = pl.cdiv(R, block_rows)
    kernel = _make_kernel_xz(params["lefts"], params["coefs"], input_noise, output_noise)
    return pl.pallas_call(
        kernel,
        out_shape=jax.ShapeDtypeStruct((R, 128), jnp.float32),
        grid=(n_blocks,),
        in_specs=[
            pl.BlockSpec((block_rows, 128), lambda i: (i, 0)),   # x tile
            pl.BlockSpec((block_rows, 128), lambda i: (i, 0)),   # z tile
        ],
        out_specs=pl.BlockSpec((block_rows, 128), lambda i: (i, 0)),
        # Y overwrites Z's HBM buffer (z block fully consumed before the block's store).
        input_output_aliases={1: 0},
        compiler_params=_compiler_params(n_blocks, vmem_limit),
    )(x2, z2)


def _forward_pallas_rng(params, x2, seed_arr, input_noise, output_noise):
    R = x2.shape[0]
    block_rows, vmem_limit = _block_cfg(R)
    n_blocks = pl.cdiv(R, block_rows)
    kernel = _make_kernel_rng(params["lefts"], params["coefs"], input_noise, output_noise)
    return pl.pallas_call(
        kernel,
        out_shape=jax.ShapeDtypeStruct((R, 128), jnp.float32),
        grid_spec=pltpu.PrefetchScalarGridSpec(
            num_scalar_prefetch=1,
            grid=(n_blocks,),
            in_specs=[pl.BlockSpec((block_rows, 128), lambda i, seed: (i, 0))],
            out_specs=pl.BlockSpec((block_rows, 128), lambda i, seed: (i, 0)),
        ),
        compiler_params=_compiler_params(n_blocks, vmem_limit),
    )(seed_arr, x2)


def _spline_forward_jnp(x_flat, z_flat, params, input_noise, output_noise):
    """Fused XLA fallback (same math). Used for small or non-128-aligned N."""
    eval_fn = _make_eval(params["lefts"], params["coefs"])
    x = x_flat
    if input_noise:
        x = x + z_flat
    y = eval_fn(x)
    if output_noise:
        y = y + z_flat
    return y


# ----------------------------------------------------------------------------
# Public forward
# ----------------------------------------------------------------------------
def random_spline_scm_forward(params, X, Z=None, *, input_noise=False,
                              output_noise=True, key=None, seed=None,
                              use_pallas=None, in_kernel_rng=None):
    """Forward pass. X: (N, 1) float32. Z: (N, 1)/(N,) float32, or None -> N(0,1)
    (requires `key` or `seed`)."""
    N = X.shape[0]

    if Z is None and key is None and seed is None:
        raise ValueError("Z=None requires `key` or `seed` to sample the N(0,1) noise.")

    # Pallas path requires 128-aligned N so the (N,1) -> (R,128) reshape is a free
    # metadata op (no jnp.pad before / no [:N] slice after => no extra HBM round trips).
    aligned = (N % 128 == 0)
    if use_pallas is None:
        use_pallas = aligned and N >= MIN_PALLAS_N
    use_pallas = bool(use_pallas) and aligned

    if in_kernel_rng is None:
        kind = _device_kind()
        # v5e/v6e are HBM-bound here -> generating Z on-chip cuts bytes ~33%.
        # v7x is VALU-bound -> keep streaming Z from HBM.
        in_kernel_rng = not ("v7" in kind or "7x" in kind)
    gen_in_kernel = (Z is None) and use_pallas and in_kernel_rng \
        and hasattr(pltpu, "stateful_normal")

    if Z is None and not gen_in_kernel:
        if key is None:
            key = jax.random.PRNGKey(int(seed))
        Z = jax.random.normal(key, (N,), dtype=jnp.float32)

    if not use_pallas:
        x_flat = jnp.reshape(X, (-1,)).astype(jnp.float32)
        z_flat = jnp.reshape(Z, (-1,)).astype(jnp.float32)
        y = _spline_forward_jnp(x_flat, z_flat, params, input_noise, output_noise)
        return y.reshape(N, 1)

    R = N // 128
    x2 = jnp.reshape(X, (R, 128)).astype(jnp.float32)

    if gen_in_kernel:
        if seed is not None:
            seed_arr = jnp.asarray([int(seed) & 0x7FFFFFFF], dtype=jnp.int32)
        else:
            seed_arr = jax.random.randint(key, (1,), 0, 2 ** 31 - 1, dtype=jnp.int32)
        try:
            y2 = _forward_pallas_rng(params, x2, seed_arr, input_noise, output_noise)
            return y2.reshape(N, 1)
        except Exception:
            # In-kernel TPU PRNG unavailable on this backend/JAX build: fall back to
            # host-side Z + the (verified) two-stream kernel. Semantics unchanged.
            if key is None:
                key = jax.random.PRNGKey(int(seed))
            Z = jax.random.normal(key, (N,), dtype=jnp.float32)

    z2 = jnp.reshape(Z, (R, 128)).astype(jnp.float32)
    y2 = _forward_pallas_xz(params, x2, z2, input_noise, output_noise)
    return y2.reshape(N, 1)


# ----------------------------------------------------------------------------
if __name__ == "__main__":
    key = jax.random.PRNGKey(0)
    kx, kz, kx2, kz2, kr = jax.random.split(key, 5)

    params = init_random_spline_scm_params(span=6, num_anchors=10, order=3,
                                           range_scale=1.0, seed=0)

    # --- Pallas path (128-aligned N, explicit Z) vs float64 de Boor reference ----------
    N = 256
    X = jax.random.normal(kx, (N, 1), dtype=jnp.float32) * 2.0
    Z = jax.random.normal(kz, (N, 1), dtype=jnp.float32)    # module's sample(N)
    Y = random_spline_scm_forward(params, X, Z, use_pallas=True)
    Y = jax.block_until_ready(Y)

    X_np = np.asarray(X, dtype=np.float64).reshape(-1)
    Y_ref = _splev_ref(X_np, params["knots"], params["bspl_coefs"], params["order"])
    Y_ref = Y_ref.reshape(-1, 1).astype(np.float32) + np.asarray(Z)
    np.testing.assert_allclose(np.asarray(Y), Y_ref, rtol=1e-3, atol=1e-3)

    # --- jnp fallback path (small, non-128-aligned N: no pad/slice copies) -------------
    N2 = 50
    X2 = jax.random.normal(kx2, (N2, 1), dtype=jnp.float32) * 2.0
    Z2 = jax.random.normal(kz2, (N2, 1), dtype=jnp.float32)
    Y2 = jax.block_until_ready(random_spline_scm_forward(params, X2, Z2))
    Y2_ref = _splev_ref(np.asarray(X2, dtype=np.float64).reshape(-1),
                        params["knots"], params["bspl_coefs"], params["order"])
    Y2_ref = Y2_ref.reshape(-1, 1).astype(np.float32) + np.asarray(Z2)
    np.testing.assert_allclose(np.asarray(Y2), Y2_ref, rtol=1e-3, atol=1e-3)

    # --- Z=None path (in-kernel TPU PRNG on v5e/v6e, host-side Z elsewhere) ------------
    Y3 = jax.block_until_ready(
        random_spline_scm_forward(params, X, Z=None, key=kr, use_pallas=True))
    assert Y3.shape == (N, 1) and bool(jnp.all(jnp.isfinite(Y3)))

    print("KERNEL_OK")
</pallas_src>

<mosaic_0001>
module attributes {stable_mosaic.version = 11 : i64} {
  func.func @kernel(%arg0: i32, %arg1: memref<2x128xf32, #tpu.memory_space<vmem>>, %arg2: memref<2x128xf32, #tpu.memory_space<vmem>>, %arg3: memref<2x128xf32, #tpu.memory_space<vmem>>) attributes {dimension_semantics = [#tpu.dimension_semantics<parallel>], iteration_bounds = array<i64: 1>, scalar_prefetch = 0 : i64, scratch_operands = 0 : i64, tpu.core_type = #tpu.core_type<tc>, window_params = [{transform_indices = @transform_0, window_bounds = array<i64: 2, 128>}, {transform_indices = @transform_1, window_bounds = array<i64: 2, 128>}, {transform_indices = @transform_2, window_bounds = array<i64: 2, 128>}]} {
    %c0 = arith.constant 0 : index
    %c0_0 = arith.constant 0 : index
    %0 = vector.load %arg1[%c0, %c0_0] : memref<2x128xf32, #tpu.memory_space<vmem>>, vector<2x128xf32>
    %c0_1 = arith.constant 0 : index
    %c0_2 = arith.constant 0 : index
    %1 = vector.load %arg2[%c0_1, %c0_2] : memref<2x128xf32, #tpu.memory_space<vmem>>, vector<2x128xf32>
    %cst = arith.constant -6.000000e+00 : f32
    %2 = vector.broadcast %cst : f32 to vector<2x128xf32>
    %cst_3 = arith.constant 1.64354026 : f32
    %3 = vector.broadcast %cst_3 : f32 to vector<2x128xf32>
    %cst_4 = arith.constant -4.71978951 : f32
    %4 = vector.broadcast %cst_4 : f32 to vector<2x128xf32>
    %cst_5 = arith.constant 1.35863125 : f32
    %5 = vector.broadcast %cst_5 : f32 to vector<2x128xf32>
    %cst_6 = arith.constant -0.222915068 : f32
    %6 = vector.broadcast %cst_6 : f32 to vector<2x128xf32>
    %cst_7 = arith.constant -3.33333325 : f32
    %7 = vector.broadcast %cst_7 : f32 to vector<2x128xf32>
    %8 = arith.cmpf oge, %0, %7 : vector<2x128xf32>
    %cst_8 = arith.constant -3.33333325 : f32
    %9 = vector.broadcast %cst_8 : f32 to vector<2x128xf32>
    %10 = arith.select %8, %9, %2 : vector<2x128xi1>, vector<2x128xf32>
    %cst_9 = arith.constant -5.50831795 : f32
    %11 = vector.broadcast %cst_9 : f32 to vector<2x128xf32>
    %12 = arith.select %8, %11, %3 : vector<2x128xi1>, vector<2x128xf32>
    %cst_10 = arith.constant -2.22927761 : f32
    %13 = vector.broadcast %cst_10 : f32 to vector<2x128xf32>
    %14 = arith.select %8, %13, %4 : vector<2x128xi1>, vector<2x128xf32>
    %cst_11 = arith.constant -0.424689233 : f32
    %15 = vector.broadcast %cst_11 : f32 to vector<2x128xf32>
    %16 = arith.select %8, %15, %5 : vector<2x128xi1>, vector<2x128xf32>
    %cst_12 = arith.constant 1.4487282 : f32
    %17 = vector.broadcast %cst_12 : f32 to vector<2x128xf32>
    %18 = arith.select %8, %17, %6 : vector<2x128xi1>, vector<2x128xf32>
    %cst_13 = arith.constant -2.000000e+00 : f32
    %19 = vector.broadcast %cst_13 : f32 to vector<2x128xf32>
    %20 = arith.cmpf oge, %0, %19 : vector<2x128xf32>
    %cst_14 = arith.constant -2.000000e+00 : f32
    %21 = vector.broadcast %cst_14 : f32 to vector<2x128xf32>
    %22 = arith.select %20, %21, %10 : vector<2x128xi1>, vector<2x128xf32>
    %cst_15 = arith.constant -5.80166817 : f32
    %23 = vector.broadcast %cst_15 : f32 to vector<2x128xf32>
    %24 = arith.select %20, %23, %12 : vector<2x128xi1>, vector<2x128xf32>
    %cst_16 = arith.constant 4.36476851 : f32
    %25 = vector.broadcast %cst_16 : f32 to vector<2x128xf32>
    %26 = arith.select %20, %25, %14 : vector<2x128xi1>, vector<2x128xf32>
    %cst_17 = arith.constant 5.37022352 : f32
    %27 = vector.broadcast %cst_17 : f32 to vector<2x128xf32>
    %28 = arith.select %20, %27, %16 : vector<2x128xi1>, vector<2x128xf32>
    %cst_18 = arith.constant -2.44934058 : f32
    %29 = vector.broadcast %cst_18 : f32 to vector<2x128xf32>
    %30 = arith.select %20, %29, %18 : vector<2x128xi1>, vector<2x128xf32>
    %cst_19 = arith.constant -0.666666686 : f32
    %31 = vector.broadcast %cst_19 : f32 to vector<2x128xf32>
    %32 = arith.cmpf oge, %0, %31 : vector<2x128xf32>
    %cst_20 = arith.constant -0.666666686 : f32
    %33 = vector.broadcast %cst_20 : f32 to vector<2x128xf32>
    %34 = arith.select %32, %33, %22 : vector<2x128xi1>, vector<2x128xf32>
    %cst_21 = arith.constant 3.75924277 : f32
    %35 = vector.broadcast %cst_21 : f32 to vector<2x128xf32>
    %36 = arith.select %32, %35, %24 : vector<2x128xi1>, vector<2x128xf32>
    %cst_22 = arith.constant 5.62221527 : f32
    %37 = vector.broadcast %cst_22 : f32 to vector<2x128xf32>
    %38 = arith.select %32, %37, %26 : vector<2x128xi1>, vector<2x128xf32>
    %cst_23 = arith.constant -4.42713881 : f32
    %39 = vector.broadcast %cst_23 : f32 to vector<2x128xf32>
    %40 = arith.select %32, %39, %28 : vector<2x128xi1>, vector<2x128xf32>
    %cst_24 = arith.constant 0.6615026 : f32
    %41 = vector.broadcast %cst_24 : f32 to vector<2x128xf32>
    %42 = arith.select %32, %41, %30 : vector<2x128xi1>, vector<2x128xf32>
    %cst_25 = arith.constant 0.666666686 : f32
    %43 = vector.broadcast %cst_25 : f32 to vector<2x128xf32>
    %44 = arith.cmpf oge, %0, %43 : vector<2x128xf32>
    %cst_26 = arith.constant 0.666666686 : f32
    %45 = vector.broadcast %cst_26 : f32 to vector<2x128xf32>
    %46 = arith.select %44, %45, %34 : vector<2x128xi1>, vector<2x128xf32>
    %cst_27 = arith.constant 4.95306683 : f32
    %47 = vector.broadcast %cst_27 : f32 to vector<2x128xf32>
    %48 = arith.select %44, %47, %36 : vector<2x128xi1>, vector<2x128xf32>
    %cst_28 = arith.constant -2.65547442 : f32
    %49 = vector.broadcast %cst_28 : f32 to vector<2x128xf32>
    %50 = arith.select %44, %49, %38 : vector<2x128xi1>, vector<2x128xf32>
    %cst_29 = arith.constant -1.78112841 : f32
    %51 = vector.broadcast %cst_29 : f32 to vector<2x128xf32>
    %52 = arith.select %44, %51, %40 : vector<2x128xi1>, vector<2x128xf32>
    %cst_30 = arith.constant 1.27981913 : f32
    %53 = vector.broadcast %cst_30 : f32 to vector<2x128xf32>
    %54 = arith.select %44, %53, %42 : vector<2x128xi1>, vector<2x128xf32>
    %cst_31 = arith.constant 2.000000e+00 : f32
    %55 = vector.broadcast %cst_31 : f32 to vector<2x128xf32>
    %56 = arith.cmpf oge, %0, %55 : vector<2x128xf32>
    %cst_32 = arith.constant 2.000000e+00 : f32
    %57 = vector.broadcast %cst_32 : f32 to vector<2x128xf32>
    %58 = arith.select %56, %57, %46 : vector<2x128xi1>, vector<2x128xf32>
    %cst_33 = arith.constant 1.27962935 : f32
    %59 = vector.broadcast %cst_33 : f32 to vector<2x128xf32>
    %60 = arith.select %56, %59, %48 : vector<2x128xi1>, vector<2x128xf32>
    %cst_34 = arith.constant -5.794480e-01 : f32
    %61 = vector.broadcast %cst_34 : f32 to vector<2x128xf32>
    %62 = arith.select %56, %61, %50 : vector<2x128xi1>, vector<2x128xf32>
    %cst_35 = arith.constant 3.33814812 : f32
    %63 = vector.broadcast %cst_35 : f32 to vector<2x128xf32>
    %64 = arith.select %56, %63, %52 : vector<2x128xi1>, vector<2x128xf32>
    %cst_36 = arith.constant -1.55568898 : f32
    %65 = vector.broadcast %cst_36 : f32 to vector<2x128xf32>
    %66 = arith.select %56, %65, %54 : vector<2x128xi1>, vector<2x128xf32>
    %cst_37 = arith.constant 3.33333325 : f32
    %67 = vector.broadcast %cst_37 : f32 to vector<2x128xf32>
    %68 = arith.cmpf oge, %0, %67 : vector<2x128xf32>
    %cst_38 = arith.constant 3.33333325 : f32
    %69 = vector.broadcast %cst_38 : f32 to vector<2x128xf32>
    %70 = arith.select %68, %69, %58 : vector<2x128xi1>, vector<2x128xf32>
    %cst_39 = arith.constant 2.7539587 : f32
    %71 = vector.broadcast %cst_39 : f32 to vector<2x128xf32>
    %72 = arith.select %68, %71, %60 : vector<2x128xi1>, vector<2x128xf32>
    %cst_40 = arith.constant 0.0252729282 : f32
    %73 = vector.broadcast %cst_40 : f32 to vector<2x128xf32>
    %74 = arith.select %68, %73, %62 : vector<2x128xi1>, vector<2x128xf32>
    %cst_41 = arith.constant -2.88460755 : f32
    %75 = vector.broadcast %cst_41 : f32 to vector<2x128xf32>
    %76 = arith.select %68, %75, %64 : vector<2x128xi1>, vector<2x128xf32>
    %cst_42 = arith.constant 1.20826483 : f32
    %77 = vector.broadcast %cst_42 : f32 to vector<2x128xf32>
    %78 = arith.select %68, %77, %66 : vector<2x128xi1>, vector<2x128xf32>
    %79 = arith.subf %0, %70 : vector<2x128xf32>
    %80 = arith.mulf %79, %78 : vector<2x128xf32>
    %81 = arith.addf %76, %80 : vector<2x128xf32>
    %82 = arith.mulf %79, %81 : vector<2x128xf32>
    %83 = arith.addf %74, %82 : vector<2x128xf32>
    %84 = arith.mulf %79, %83 : vector<2x128xf32>
    %85 = arith.addf %72, %84 : vector<2x128xf32>
    %86 = arith.addf %85, %1 : vector<2x128xf32>
    %c0_43 = arith.constant 0 : index
    %c0_44 = arith.constant 0 : index
    %87 = vector.load %arg3[%c0_43, %c0_44] : memref<2x128xf32, #tpu.memory_space<vmem>>, vector<2x128xf32>
    tpu.vector_store %arg3[%c0_43, %c0_44], %86 {strides = array<i32>} : memref<2x128xf32, #tpu.memory_space<vmem>>, vector<2x128xf32>,
    return
  }
  func.func @transform_0(%arg0: i32) -> (i32, i32) {
    %c0_i32 = arith.constant 0 : i32
    %c0_i32_0 = arith.constant 0 : i32
    return %arg0, %c0_i32 : i32, i32
  }
  func.func @transform_1(%arg0: i32) -> (i32, i32) {
    %c0_i32 = arith.constant 0 : i32
    %c0_i32_0 = arith.constant 0 : i32
    return %arg0, %c0_i32 : i32, i32
  }
  func.func @transform_2(%arg0: i32) -> (i32, i32) {
    %c0_i32 = arith.constant 0 : i32
    %c0_i32_0 = arith.constant 0 : i32
    return %arg0, %c0_i32 : i32, i32
  }
}

</mosaic_0001>

<bundles_post_ra>
// kernel: tpu_custom_call.1
= control target key start
LH: loop header
LB: loop body
LE: loop exit
PB: predicated region body
PF: predicated region fallthrough
CT: control target
= control target key end

     0   :  { %7 = vsyncpa [#allocation3], 0  ;;  %s193_s0 = inlined_call_operand.vmem [shape: f32[2,128], index: 0, kind: input, shape index: {}]   ;;  %s194_s1 = inlined_call_operand.hbm [shape: f32[2,128], index: 1, kind: input, shape index: {}, may-alias: {1,2}]   ;;  %s195_s2 = inlined_call_operand.hbm [shape: f32[2,128], index: 2, kind: output, shape index: {}, may-alias: {1,2}]  }
   0x1   :  { %8 = vsyncpa [#allocation4], 0  ;;  %s137_s9 = smov [#allocation2]  }
   0x2   :  { %s17_s10 = sshll.u32 %s137_s9, 4  ;;  %s18_s10 = int_to_ptr.vmem [resolvable:$true] %s17_s10 }
   0x3   :  { %s101_s11 = scalar_lea.vmem %s18_s10, 32  ;;  %p106_p1 = scmp.lt.s32.totalorder %s18_s10, %s18_s10 }
   0x4   :  { %p102_p0 = scmp.ne.s32.totalorder %s18_s10, %s101_s11  ;;  %p107_p2 = scmp.lt.s32.totalorder %s101_s11, %s101_s11 }
   0x6   :  { %p108_p3 = por %p107_p2, %p106_p1 }
   0x8   :  { %p109_p4 = pnand %p108_p3, %p102_p0 }
   0xa   :  { %112 = shalt.err (!%p109_p4)
}
   0xb   :  { %20 = dma.hbm_to_vmem [thread:$0]  %s194_s1, 32, %s18_s10, [#allocation3]  }
   0xc   :  { %133 = dma.done.wait [#allocation3], 32  }
   0xd   :  { %134 = vsyncadd [#allocation3], 4294967264  ;;  %v24_v0 = vld [vmem:[%s193_s0] sm:$0x3]  ;;  %v138_v1 = vmov -6.0   ;;  %s143_s0 = smov [#allocation5]  }
   0xe   :  { %vm26_vm0 = vcmp.ge.f32.partialorder %v24_v0, -3.3333333  ;;  %vm32_vm1 = vcmp.ge.f32.partialorder %v24_v0, -2.0  ;;  %v139_v3 = vmov -4.7197895   ;;  %vm50_vm3 = vcmp.ge.f32.partialorder %v24_v0, 2.0 }
   0xf   :  { %v27_v2 = vsel %vm26_vm0, -3.3333333, %v138_v1  ;;  %v29_v4 = vsel %vm26_vm0, -2.2292776, %v139_v3  ;;  %vm38_vm2 = vcmp.ge.f32.partialorder %v24_v0, -0.6666667 }
  0x10   :  { %v140_v5 = vmov 1.3586313   ;;  %v141_v7 = vmov -0.22291507   ;;  %v33_v9 = vsel %vm32_vm1, -2.0, %v27_v2  ;;  %s77_s1 = sshll.u32 %s143_s0, 4  ;;  %s78_s1 = int_to_ptr.vmem [resolvable:$true] %s77_s1 }
  0x11   :  { %v30_v6 = vsel %vm26_vm0, -0.42468923, %v140_v5  ;;  %v31_v8 = vsel %vm26_vm0, 1.4487282, %v141_v7  ;;  %v142_v10 = vmov 1.6435403   ;;  %p118_p6 = scmp.lt.s32.totalorder %s78_s1, %s78_s1 }
  0x12   :  { %v28_v11 = vsel %vm26_vm0, -5.508318, %v142_v10  ;;  %v36_v12 = vsel %vm32_vm1, 5.3702235, %v30_v6  ;;  %v35_v13 = vsel %vm32_vm1, 4.3647685, %v29_v4 }
  0x13   :  { %v37_v14 = vsel %vm32_vm1, -2.4493406, %v31_v8  ;;  %v39_v15 = vsel %vm38_vm2, -0.6666667, %v33_v9  ;;  %v42_v16 = vsel %vm38_vm2, -4.427139, %v36_v12 }
  0x14   :  { %v43_v17 = vsel %vm38_vm2, 0.6615026, %v37_v14  ;;  %v34_v18 = vsel %vm32_vm1, -5.801668, %v28_v11  ;;  %vm44_vm4 = vcmp.ge.f32.partialorder %v24_v0, 0.6666667 }
  0x15   :  { %v41_v19 = vsel %vm38_vm2, 5.6222153, %v35_v13  ;;  %v45_v20 = vsel %vm44_vm4, 0.6666667, %v39_v15  ;;  %vm56_vm5 = vcmp.ge.f32.partialorder %v24_v0, 3.3333333 }
  0x16   :  { %v48_v21 = vsel %vm44_vm4, -1.7811284, %v42_v16  ;;  %v49_v22 = vsel %vm44_vm4, 1.2798191, %v43_v17  ;;  %v51_v23 = vsel %vm50_vm3, 2.0, %v45_v20  ;;  %s113_s16 = scalar_lea.vmem %s78_s1, 32 }
  0x17   :  { %v54_v24 = vsel %vm50_vm3, 3.338148, %v48_v21  ;;  %v47_v25 = vsel %vm44_vm4, -2.6554744, %v41_v19  ;;  %v55_v26 = vsel %vm50_vm3, -1.555689, %v49_v22  ;;  %p114_p5 = scmp.ne.s32.totalorder %s78_s1, %s113_s16  ;;  %p119_p7 = scmp.lt.s32.totalorder %s113_s16, %s113_s16 }
  0x18   :  { %v57_v27 = vsel %vm56_vm5, 3.3333333, %v51_v23  ;;  %v40_v28 = vsel %vm38_vm2, 3.7592428, %v34_v18  ;;  %v61_v29 = vsel %vm56_vm5, 1.2082648, %v55_v26 }
  0x19   :  { %v62_v30 = vsub.f32 %v24_v0, %v57_v27  ;;  %v60_v31 = vsel %vm56_vm5, -2.8846076, %v54_v24  ;;  %v53_v32 = vsel %vm50_vm3, -0.579448, %v47_v25  ;;  %v46_v34 = vsel %vm44_vm4, 4.953067, %v40_v28  ;;  %p120_p8 = por %p119_p7, %p118_p6 }
  0x1a   :  { %v59_v36 = vsel %vm56_vm5, 0.025272928, %v53_v32  ;;  %v52_v37 = vsel %vm50_vm3, 1.2796293, %v46_v34  ;;  %v25_v42 = vld [vmem:[#allocation2] sm:$0x3] }
  0x1b   :  { %v63_v33 = vmul.f32 %v62_v30, %v61_v29  ;;  %v58_v40 = vsel %vm56_vm5, 2.7539587, %v52_v37  ;;  %p121_p9 = pnand %p120_p8, %p114_p5 }
  0x1d   :  { %v64_v35 = vadd.f32 %v63_v33, %v60_v31 }
  0x1f   :  { %v65_v38 = vmul.f32 %v64_v35, %v62_v30 }
  0x21   :  { %v66_v39 = vadd.f32 %v65_v38, %v59_v36 }
  0x23   :  { %v67_v41 = vmul.f32 %v66_v39, %v62_v30 }
  0x25   :  { %v68_v43 = vadd.f32 %v67_v41, %v58_v40 }
  0x27   :  { %v69_v44 = vadd.f32 %v68_v43, %v25_v42 }
  0x29   :  { %70 = vst [vmem:[#allocation5] sm:$0x3] %v69_v44 }
  0x2a   :  { %124 = shalt.err (!%p121_p9)
}
  0x2b   :  { %80 = dma.vmem_to_hbm [thread:$0]  %s78_s1, 32, %s195_s2, [#allocation4]  }
  0x2c   :  { %135 = dma.done.wait [#allocation4], 32  }
  0x2d   :  { %136 = vsyncadd [#allocation4], 4294967264 }
  0x2e   :  { %84 = vsyncpa [#allocation3], 1 }
  0x2f   :  { %85 = vsyncpa [#allocation4], 1 }

</bundles_post_ra>
